<compile_context>
chip_gen: v7x
topology: tpu7x:2x2x1
jax: 0.10.0
libtpu: 0.0.40
codegen_flags: <defaults>
</compile_context>

<pallas_src>
import jax
import jax.numpy as jnp
from jax.experimental import pallas as pl
from jax.experimental.pallas import tpu as pltpu


INPUT_SIZE = 32
OUT_SIZE = 8 * 3            # decoder output width = 24
MAX_TILE_B = 2048           # max batch rows per grid step
MIN_GOOD_TILE = 256         # below this, prefer padding the batch over tiny tiles


def vae_forward_kernel(
    x_ref,                   # (tile_b, 32) f32
    w_e1r_ref, b_e1r_ref,    # fused encoder L1 + residual : (32, 72) bf16, (1, 72) f32
    w_e2_ref, b_e2_ref,      # (64, 32) bf16, (1, 32) f32
    w_e3_ref, b_e3_ref,      # (32, 8)  bf16, (1, 8)  f32
    w_d1_ref, b_d1_ref,      # (8, 32)  bf16, (1, 32) f32
    w_d2_ref, b_d2_ref,      # (32, 64) bf16, (1, 64) f32
    w_d3_ref, b_d3_ref,      # (64, 24) bf16, (1, 24) f32
    out_ref,                 # (tile_b, 24) f32
):
    # bf16 matmul operands, f32 accumulation; tanh / adds stay in f32.
    x = x_ref[...].astype(jnp.bfloat16)

    # Fused encoder layer 1 + residual branch: one MXU pass over the x tile.
    y = jnp.dot(x, w_e1r_ref[...], preferred_element_type=jnp.float32) + b_e1r_ref[...]
    h = jnp.tanh(y[:, :64])          # encoder layer-1 activations
    r = y[:, 64:64 + 8]              # residual branch (linear)

    # Remaining encoder layers.
    h = jnp.tanh(
        jnp.dot(h.astype(jnp.bfloat16), w_e2_ref[...],
                preferred_element_type=jnp.float32) + b_e2_ref[...])
    h = jnp.tanh(
        jnp.dot(h.astype(jnp.bfloat16), w_e3_ref[...],
                preferred_element_type=jnp.float32) + b_e3_ref[...])

    encoded = h + r

    # Decoder.
    d = jnp.tanh(
        jnp.dot(encoded.astype(jnp.bfloat16), w_d1_ref[...],
                preferred_element_type=jnp.float32) + b_d1_ref[...])
    d = jnp.tanh(
        jnp.dot(d.astype(jnp.bfloat16), w_d2_ref[...],
                preferred_element_type=jnp.float32) + b_d2_ref[...])
    d = jnp.dot(d.astype(jnp.bfloat16), w_d3_ref[...],
                preferred_element_type=jnp.float32) + b_d3_ref[...]

    out_ref[...] = d.astype(out_ref.dtype)


# ------------------------------- tiling -------------------------------------

def _round_up(n, m):
    return (n + m - 1) // m * m


def _choose_tiling(batch):
    """Return (padded_batch, tile_b): tile_b % 8 == 0, padded_batch % tile_b == 0."""
    padded = _round_up(batch, 8)
    desired = min(MAX_TILE_B, padded)
    # v7x megacore: keep >= 2 grid steps so the "parallel" batch axis actually
    # splits across both TensorCores (free on single-TC v5e/v6e).
    if padded >= 16:
        desired = min(desired, _round_up(pl.cdiv(padded, 2), 8))
    # Prefer a tile that divides the 8-rounded batch: no extra pad, and the
    # post-kernel out[:batch] slice becomes a no-op.
    best = 8
    for d in range(8, desired + 1, 8):
        if padded % d == 0:
            best = d
    if best >= min(desired, MIN_GOOD_TILE):
        return padded, best
    # Pathological batch (e.g. 8 * large prime): pad up to a full tile instead.
    return _round_up(padded, desired), desired


def _resident_spec(arr):
    # Full-array block with a constant block index: DMA'd once, stays
    # VMEM-resident across all grid steps.
    return pl.BlockSpec(arr.shape, lambda i: (0, 0))


@jax.jit
def vae_forward(x, kernel_params):
    batch = x.shape[0]
    padded_batch, tile_b = _choose_tiling(batch)
    if padded_batch != batch:
        x = jnp.pad(x, ((0, padded_batch - batch), (0, 0)))

    grid = (padded_batch // tile_b,)

    in_specs = [pl.BlockSpec((tile_b, INPUT_SIZE), lambda i: (i, 0))]
    in_specs += [_resident_spec(p) for p in kernel_params]

    out = pl.pallas_call(
        vae_forward_kernel,
        out_shape=jax.ShapeDtypeStruct((padded_batch, OUT_SIZE), jnp.float32),
        grid=grid,
        in_specs=in_specs,
        out_specs=pl.BlockSpec((tile_b, OUT_SIZE), lambda i: (i, 0)),
        compiler_params=pltpu.CompilerParams(
            dimension_semantics=("parallel",),      # megacore on v7x
            vmem_limit_bytes=32 * 1024 * 1024,      # safe on v5e/v6e/v7x
        ),
    )(x, *kernel_params)

    if padded_batch != batch:
        out = out[:batch]
    return out


# --------------------------- parameter handling -----------------------------

def init_linear(key, fan_in, fan_out):
    """PyTorch-style uniform(-1/sqrt(fan_in), 1/sqrt(fan_in)) init.

    Returns W with shape (fan_in, fan_out) (already transposed for x @ W)
    and bias with shape (1, fan_out).
    """
    kw, kb = jax.random.split(key)
    bound = 1.0 / jnp.sqrt(jnp.float32(fan_in))
    w = jax.random.uniform(kw, (fan_in, fan_out), jnp.float32, -bound, bound)
    b = jax.random.uniform(kb, (1, fan_out), jnp.float32, -bound, bound)
    return w, b


def make_raw_params(key):
    keys = jax.random.split(key, 7)
    return dict(
        e1=init_linear(keys[0], INPUT_SIZE, 64),
        e2=init_linear(keys[1], 64, 32),
        e3=init_linear(keys[2], 32, 8),
        res=init_linear(keys[3], INPUT_SIZE, 8),
        d1=init_linear(keys[4], 8, 32),
        d2=init_linear(keys[5], 32, 64),
        d3=init_linear(keys[6], 64, OUT_SIZE),
    )


def make_kernel_params(raw):
    (w_e1, b_e1), (w_e2, b_e2), (w_e3, b_e3) = raw["e1"], raw["e2"], raw["e3"]
    (w_r, b_r) = raw["res"]
    (w_d1, b_d1), (w_d2, b_d2), (w_d3, b_d3) = raw["d1"], raw["d2"], raw["d3"]

    # Fuse encoder layer 1 and the residual branch into one (32, 72) matmul.
    w_e1r = jnp.concatenate([w_e1, w_r], axis=1)
    b_e1r = jnp.concatenate([b_e1, b_r], axis=1)

    bf16 = lambda w: w.astype(jnp.bfloat16)   # weights bf16; biases stay f32
    return (bf16(w_e1r), b_e1r,
            bf16(w_e2), b_e2,
            bf16(w_e3), b_e3,
            bf16(w_d1), b_d1,
            bf16(w_d2), b_d2,
            bf16(w_d3), b_d3)


def vae_forward_ref(x, raw):
    (w_e1, b_e1), (w_e2, b_e2), (w_e3, b_e3) = raw["e1"], raw["e2"], raw["e3"]
    (w_r, b_r) = raw["res"]
    (w_d1, b_d1), (w_d2, b_d2), (w_d3, b_d3) = raw["d1"], raw["d2"], raw["d3"]
    h = jnp.tanh(x @ w_e1 + b_e1)
    h = jnp.tanh(h @ w_e2 + b_e2)
    h = jnp.tanh(h @ w_e3 + b_e3)
    e = h + (x @ w_r + b_r)
    d = jnp.tanh(e @ w_d1 + b_d1)
    d = jnp.tanh(d @ w_d2 + b_d2)
    return d @ w_d3 + b_d3


if __name__ == "__main__":
    key = jax.random.PRNGKey(0)
    k_params, k_x1, k_x2, k_x3 = jax.random.split(key, 4)

    raw = make_raw_params(k_params)
    kparams = make_kernel_params(raw)

    # bf16 matmul operands -> loosened tolerance vs the f32 reference.
    ATOL = RTOL = 3e-2

    # Small batch: single grid step, no padding.
    x_small = jax.random.normal(k_x1, (8, INPUT_SIZE), jnp.float32)
    out_small = jax.block_until_ready(vae_forward(x_small, kparams))
    ref_small = vae_forward_ref(x_small, raw)
    assert out_small.shape == (8, OUT_SIZE), out_small.shape
    assert jnp.allclose(out_small, ref_small, atol=ATOL, rtol=RTOL), "small-batch mismatch"

    # Ragged batch: exercises row padding (13 -> 16), 2 grid steps, final slice.
    x_odd = jax.random.normal(k_x3, (13, INPUT_SIZE), jnp.float32)
    out_odd = jax.block_until_ready(vae_forward(x_odd, kparams))
    ref_odd = vae_forward_ref(x_odd, raw)
    assert out_odd.shape == (13, OUT_SIZE), out_odd.shape
    assert jnp.allclose(out_odd, ref_odd, atol=ATOL, rtol=RTOL), "ragged-batch mismatch"

    # Larger batch (multiple of 8): tile divides the batch -> no pad, no slice,
    # grid=(2,) so both v7x TensorCores are used.
    x_big = jax.random.normal(k_x2, (2000, INPUT_SIZE), jnp.float32)
    out_big = jax.block_until_ready(vae_forward(x_big, kparams))
    ref_big = vae_forward_ref(x_big, raw)
    assert out_big.shape == (2000, OUT_SIZE), out_big.shape
    assert jnp.allclose(out_big, ref_big, atol=ATOL, rtol=RTOL), "tiled-batch mismatch"

    print("KERNEL_OK")
</pallas_src>

<mosaic_0001>
module attributes {stable_mosaic.version = 11 : i64} {
  func.func @vae_forward_kernel(%arg0: i32, %arg1: memref<8x32xf32, #tpu.memory_space<vmem>>, %arg2: memref<32x72xbf16, #tpu.memory_space<vmem>>, %arg3: memref<1x72xf32, #tpu.memory_space<vmem>>, %arg4: memref<64x32xbf16, #tpu.memory_space<vmem>>, %arg5: memref<1x32xf32, #tpu.memory_space<vmem>>, %arg6: memref<32x8xbf16, #tpu.memory_space<vmem>>, %arg7: memref<1x8xf32, #tpu.memory_space<vmem>>, %arg8: memref<8x32xbf16, #tpu.memory_space<vmem>>, %arg9: memref<1x32xf32, #tpu.memory_space<vmem>>, %arg10: memref<32x64xbf16, #tpu.memory_space<vmem>>, %arg11: memref<1x64xf32, #tpu.memory_space<vmem>>, %arg12: memref<64x24xbf16, #tpu.memory_space<vmem>>, %arg13: memref<1x24xf32, #tpu.memory_space<vmem>>, %arg14: memref<8x24xf32, #tpu.memory_space<vmem>>) attributes {dimension_semantics = [#tpu.dimension_semantics<parallel>], iteration_bounds = array<i64: 1>, scalar_prefetch = 0 : i64, scratch_operands = 0 : i64, tpu.core_type = #tpu.core_type<tc>, window_params = [{transform_indices = @transform_0, window_bounds = array<i64: 8, 32>}, {pipeline_mode = #tpu.pipeline_mode<synchronous>, transform_indices = @transform_1, window_bounds = array<i64: 32, 72>}, {pipeline_mode = #tpu.pipeline_mode<synchronous>, transform_indices = @transform_2, window_bounds = array<i64: 1, 72>}, {pipeline_mode = #tpu.pipeline_mode<synchronous>, transform_indices = @transform_3, window_bounds = array<i64: 64, 32>}, {pipeline_mode = #tpu.pipeline_mode<synchronous>, transform_indices = @transform_4, window_bounds = array<i64: 1, 32>}, {pipeline_mode = #tpu.pipeline_mode<synchronous>, transform_indices = @transform_5, window_bounds = array<i64: 32, 8>}, {pipeline_mode = #tpu.pipeline_mode<synchronous>, transform_indices = @transform_6, window_bounds = array<i64: 1, 8>}, {pipeline_mode = #tpu.pipeline_mode<synchronous>, transform_indices = @transform_7, window_bounds = array<i64: 8, 32>}, {pipeline_mode = #tpu.pipeline_mode<synchronous>, transform_indices = @transform_8, window_bounds = array<i64: 1, 32>}, {pipeline_mode = #tpu.pipeline_mode<synchronous>, transform_indices = @transform_9, window_bounds = array<i64: 32, 64>}, {pipeline_mode = #tpu.pipeline_mode<synchronous>, transform_indices = @transform_10, window_bounds = array<i64: 1, 64>}, {pipeline_mode = #tpu.pipeline_mode<synchronous>, transform_indices = @transform_11, window_bounds = array<i64: 64, 24>}, {pipeline_mode = #tpu.pipeline_mode<synchronous>, transform_indices = @transform_12, window_bounds = array<i64: 1, 24>}, {transform_indices = @transform_13, window_bounds = array<i64: 8, 24>}]} {
    %c0 = arith.constant 0 : index
    %c0_0 = arith.constant 0 : index
    %0 = vector.load %arg1[%c0, %c0_0] : memref<8x32xf32, #tpu.memory_space<vmem>>, vector<8x32xf32>
    %1 = arith.truncf %0 : vector<8x32xf32> to vector<8x32xbf16>
    %c0_1 = arith.constant 0 : index
    %c0_2 = arith.constant 0 : index
    %2 = vector.load %arg2[%c0_1, %c0_2] : memref<32x72xbf16, #tpu.memory_space<vmem>>, vector<32x72xbf16>
    %cst = arith.constant dense<0.000000e+00> : vector<8x72xf32>
    %3 = tpu.matmul %1, %2, %cst {dimension_numbers = #tpu.dot_dimension_numbers<[1], [0], [0], [1], [0, 0, 1, 1], [], []>} : vector<8x32xbf16>, vector<32x72xbf16>, vector<8x72xf32> -> vector<8x72xf32>
    %c0_3 = arith.constant 0 : index
    %c0_4 = arith.constant 0 : index
    %4 = vector.load %arg3[%c0_3, %c0_4] : memref<1x72xf32, #tpu.memory_space<vmem>>, vector<1x72xf32>
    %5 = vector.broadcast %4 : vector<1x72xf32> to vector<8x72xf32>
    %6 = arith.addf %3, %5 : vector<8x72xf32>
    %7 = vector.extract_strided_slice %6 {offsets = [0, 0], sizes = [8, 64], strides = [1, 1]} : vector<8x72xf32> to vector<8x64xf32>
    %8 = math.tanh %7 : vector<8x64xf32>
    %9 = vector.extract_strided_slice %6 {offsets = [0, 64], sizes = [8, 8], strides = [1, 1]} : vector<8x72xf32> to vector<8x8xf32>
    %10 = arith.truncf %8 : vector<8x64xf32> to vector<8x64xbf16>
    %c0_5 = arith.constant 0 : index
    %c0_6 = arith.constant 0 : index
    %11 = vector.load %arg4[%c0_5, %c0_6] : memref<64x32xbf16, #tpu.memory_space<vmem>>, vector<64x32xbf16>
    %cst_7 = arith.constant dense<0.000000e+00> : vector<8x32xf32>
    %12 = tpu.matmul %10, %11, %cst_7 {dimension_numbers = #tpu.dot_dimension_numbers<[1], [0], [0], [1], [0, 0, 1, 1], [], []>} : vector<8x64xbf16>, vector<64x32xbf16>, vector<8x32xf32> -> vector<8x32xf32>
    %c0_8 = arith.constant 0 : index
    %c0_9 = arith.constant 0 : index
    %13 = vector.load %arg5[%c0_8, %c0_9] : memref<1x32xf32, #tpu.memory_space<vmem>>, vector<1x32xf32>
    %14 = vector.broadcast %13 : vector<1x32xf32> to vector<8x32xf32>
    %15 = arith.addf %12, %14 : vector<8x32xf32>
    %16 = math.tanh %15 : vector<8x32xf32>
    %17 = arith.truncf %16 : vector<8x32xf32> to vector<8x32xbf16>
    %c0_10 = arith.constant 0 : index
    %c0_11 = arith.constant 0 : index
    %18 = vector.load %arg6[%c0_10, %c0_11] : memref<32x8xbf16, #tpu.memory_space<vmem>>, vector<32x8xbf16>
    %cst_12 = arith.constant dense<0.000000e+00> : vector<8x8xf32>
    %19 = tpu.matmul %17, %18, %cst_12 {dimension_numbers = #tpu.dot_dimension_numbers<[1], [0], [0], [1], [0, 0, 1, 1], [], []>} : vector<8x32xbf16>, vector<32x8xbf16>, vector<8x8xf32> -> vector<8x8xf32>
    %c0_13 = arith.constant 0 : index
    %c0_14 = arith.constant 0 : index
    %20 = vector.load %arg7[%c0_13, %c0_14] : memref<1x8xf32, #tpu.memory_space<vmem>>, vector<1x8xf32>
    %21 = vector.broadcast %20 : vector<1x8xf32> to vector<8x8xf32>
    %22 = arith.addf %19, %21 : vector<8x8xf32>
    %23 = math.tanh %22 : vector<8x8xf32>
    %24 = arith.addf %23, %9 : vector<8x8xf32>
    %25 = arith.truncf %24 : vector<8x8xf32> to vector<8x8xbf16>
    %c0_15 = arith.constant 0 : index
    %c0_16 = arith.constant 0 : index
    %26 = vector.load %arg8[%c0_15, %c0_16] : memref<8x32xbf16, #tpu.memory_space<vmem>>, vector<8x32xbf16>
    %cst_17 = arith.constant dense<0.000000e+00> : vector<8x32xf32>
    %27 = tpu.matmul %25, %26, %cst_17 {dimension_numbers = #tpu.dot_dimension_numbers<[1], [0], [0], [1], [0, 0, 1, 1], [], []>} : vector<8x8xbf16>, vector<8x32xbf16>, vector<8x32xf32> -> vector<8x32xf32>
    %c0_18 = arith.constant 0 : index
    %c0_19 = arith.constant 0 : index
    %28 = vector.load %arg9[%c0_18, %c0_19] : memref<1x32xf32, #tpu.memory_space<vmem>>, vector<1x32xf32>
    %29 = vector.broadcast %28 : vector<1x32xf32> to vector<8x32xf32>
    %30 = arith.addf %27, %29 : vector<8x32xf32>
    %31 = math.tanh %30 : vector<8x32xf32>
    %32 = arith.truncf %31 : vector<8x32xf32> to vector<8x32xbf16>
    %c0_20 = arith.constant 0 : index
    %c0_21 = arith.constant 0 : index
    %33 = vector.load %arg10[%c0_20, %c0_21] : memref<32x64xbf16, #tpu.memory_space<vmem>>, vector<32x64xbf16>
    %cst_22 = arith.constant dense<0.000000e+00> : vector<8x64xf32>
    %34 = tpu.matmul %32, %33, %cst_22 {dimension_numbers = #tpu.dot_dimension_numbers<[1], [0], [0], [1], [0, 0, 1, 1], [], []>} : vector<8x32xbf16>, vector<32x64xbf16>, vector<8x64xf32> -> vector<8x64xf32>
    %c0_23 = arith.constant 0 : index
    %c0_24 = arith.constant 0 : index
    %35 = vector.load %arg11[%c0_23, %c0_24] : memref<1x64xf32, #tpu.memory_space<vmem>>, vector<1x64xf32>
    %36 = vector.broadcast %35 : vector<1x64xf32> to vector<8x64xf32>
    %37 = arith.addf %34, %36 : vector<8x64xf32>
    %38 = math.tanh %37 : vector<8x64xf32>
    %39 = arith.truncf %38 : vector<8x64xf32> to vector<8x64xbf16>
    %c0_25 = arith.constant 0 : index
    %c0_26 = arith.constant 0 : index
    %40 = vector.load %arg12[%c0_25, %c0_26] : memref<64x24xbf16, #tpu.memory_space<vmem>>, vector<64x24xbf16>
    %cst_27 = arith.constant dense<0.000000e+00> : vector<8x24xf32>
    %41 = tpu.matmul %39, %40, %cst_27 {dimension_numbers = #tpu.dot_dimension_numbers<[1], [0], [0], [1], [0, 0, 1, 1], [], []>} : vector<8x64xbf16>, vector<64x24xbf16>, vector<8x24xf32> -> vector<8x24xf32>
    %c0_28 = arith.constant 0 : index
    %c0_29 = arith.constant 0 : index
    %42 = vector.load %arg13[%c0_28, %c0_29] : memref<1x24xf32, #tpu.memory_space<vmem>>, vector<1x24xf32>
    %43 = vector.broadcast %42 : vector<1x24xf32> to vector<8x24xf32>
    %44 = arith.addf %41, %43 : vector<8x24xf32>
    %c0_30 = arith.constant 0 : index
    %c0_31 = arith.constant 0 : index
    %45 = vector.load %arg14[%c0_30, %c0_31] : memref<8x24xf32, #tpu.memory_space<vmem>>, vector<8x24xf32>
    tpu.vector_store %arg14[%c0_30, %c0_31], %44 {strides = array<i32>} : memref<8x24xf32, #tpu.memory_space<vmem>>, vector<8x24xf32>,
    return
  }
  func.func @transform_0(%arg0: i32) -> (i32, i32) {
    %c0_i32 = arith.constant 0 : i32
    %c0_i32_0 = arith.constant 0 : i32
    return %arg0, %c0_i32 : i32, i32
  }
  func.func @transform_1(%arg0: i32) -> (i32, i32) {
    %c0_i32 = arith.constant 0 : i32
    %c0_i32_0 = arith.constant 0 : i32
    %c0_i32_1 = arith.constant 0 : i32
    return %c0_i32, %c0_i32_0 : i32, i32
  }
  func.func @transform_2(%arg0: i32) -> (i32, i32) {
    %c0_i32 = arith.constant 0 : i32
    %c0_i32_0 = arith.constant 0 : i32
    %c0_i32_1 = arith.constant 0 : i32
    return %c0_i32, %c0_i32_0 : i32, i32
  }
  func.func @transform_3(%arg0: i32) -> (i32, i32) {
    %c0_i32 = arith.constant 0 : i32
    %c0_i32_0 = arith.constant 0 : i32
    %c0_i32_1 = arith.constant 0 : i32
    return %c0_i32, %c0_i32_0 : i32, i32
  }
  func.func @transform_4(%arg0: i32) -> (i32, i32) {
    %c0_i32 = arith.constant 0 : i32
    %c0_i32_0 = arith.constant 0 : i32
    %c0_i32_1 = arith.constant 0 : i32
    return %c0_i32, %c0_i32_0 : i32, i32
  }
  func.func @transform_5(%arg0: i32) -> (i32, i32) {
    %c0_i32 = arith.constant 0 : i32
    %c0_i32_0 = arith.constant 0 : i32
    %c0_i32_1 = arith.constant 0 : i32
    return %c0_i32, %c0_i32_0 : i32, i32
  }
  func.func @transform_6(%arg0: i32) -> (i32, i32) {
    %c0_i32 = arith.constant 0 : i32
    %c0_i32_0 = arith.constant 0 : i32
    %c0_i32_1 = arith.constant 0 : i32
    return %c0_i32, %c0_i32_0 : i32, i32
  }
  func.func @transform_7(%arg0: i32) -> (i32, i32) {
    %c0_i32 = arith.constant 0 : i32
    %c0_i32_0 = arith.constant 0 : i32
    %c0_i32_1 = arith.constant 0 : i32
    return %c0_i32, %c0_i32_0 : i32, i32
  }
  func.func @transform_8(%arg0: i32) -> (i32, i32) {
    %c0_i32 = arith.constant 0 : i32
    %c0_i32_0 = arith.constant 0 : i32
    %c0_i32_1 = arith.constant 0 : i32
    return %c0_i32, %c0_i32_0 : i32, i32
  }
  func.func @transform_9(%arg0: i32) -> (i32, i32) {
    %c0_i32 = arith.constant 0 : i32
    %c0_i32_0 = arith.constant 0 : i32
    %c0_i32_1 = arith.constant 0 : i32
    return %c0_i32, %c0_i32_0 : i32, i32
  }
  func.func @transform_10(%arg0: i32) -> (i32, i32) {
    %c0_i32 = arith.constant 0 : i32
    %c0_i32_0 = arith.constant 0 : i32
    %c0_i32_1 = arith.constant 0 : i32
    return %c0_i32, %c0_i32_0 : i32, i32
  }
  func.func @transform_11(%arg0: i32) -> (i32, i32) {
    %c0_i32 = arith.constant 0 : i32
    %c0_i32_0 = arith.constant 0 : i32
    %c0_i32_1 = arith.constant 0 : i32
    return %c0_i32, %c0_i32_0 : i32, i32
  }
  func.func @transform_12(%arg0: i32) -> (i32, i32) {
    %c0_i32 = arith.constant 0 : i32
    %c0_i32_0 = arith.constant 0 : i32
    %c0_i32_1 = arith.constant 0 : i32
    return %c0_i32, %c0_i32_0 : i32, i32
  }
  func.func @transform_13(%arg0: i32) -> (i32, i32) {
    %c0_i32 = arith.constant 0 : i32
    %c0_i32_0 = arith.constant 0 : i32
    return %arg0, %c0_i32 : i32, i32
  }
}

</mosaic_0001>

<bundles_post_ra>
// kernel: vae_forward.1
= control target key start
LH: loop header
LB: loop body
LE: loop exit
PB: predicated region body
PF: predicated region fallthrough
CT: control target
= control target key end

     0   :  { %v652_v1 = vmov 0.0   ;;  %vm653_vm0 = vmmov 0   ;;  %vm71_vm1 = vcmask 261120   ;;  %s836_s0 = inlined_call_operand.vmem [shape: f32[8,32], index: 0, kind: input, shape index: {}]   ;;  %s837_s1 = inlined_call_operand.vmem [shape: bf16[32,72], index: 1, kind: input, shape index: {}]   ;;  %s838_s2 = inlined_call_operand.vmem [shape: f32[1,72], index: 2, kind: input, shape index: {}]   ;;  %s839_s3 = inlined_call_operand.vmem [shape: bf16[64,32], index: 3, kind: input, shape index: {}]   ;;  %s840_s4 = inlined_call_operand.vmem [shape: f32[1,32], index: 4, kind: input, shape index: {}]   ;;  %s841_s5 = inlined_call_operand.vmem [shape: bf16[32,8], index: 5, kind: input, shape index: {}]   ;;  %s842_s6 = inlined_call_operand.vmem [shape: f32[1,8], index: 6, kind: input, shape index: {}]   ;;  %s843_s7 = inlined_call_operand.vmem [shape: bf16[8,32], index: 7, kind: input, shape index: {}]   ;;  %s844_s8 = inlined_call_operand.vmem [shape: f32[1,32], index: 8, kind: input, shape index: {}]   ;;  %s845_s9 = inlined_call_operand.vmem [shape: bf16[32,64], index: 9, kind: input, shape index: {}]   ;;  %s846_s10 = inlined_call_operand.vmem [shape: f32[1,64], index: 10, kind: input, shape index: {}]   ;;  %s847_s11 = inlined_call_operand.vmem [shape: bf16[64,24], index: 11, kind: input, shape index: {}]   ;;  %s848_s12 = inlined_call_operand.vmem [shape: f32[1,24], index: 12, kind: input, shape index: {}]   ;;  %s849_s13 = inlined_call_operand.hbm [shape: f32[8,24], index: 13, kind: output, shape index: {}]  }
   0x1   :  { %v604_v0 = vld [vmem:[%s837_s1] sm:$0xff]   ;;  %546 = vmatprep.subr.bf16.mxu1 %v652_v1  ;;  %566 = vmatprep.subr.bf16.mxu0 %v652_v1  ;;  %v605_v2 = vld [vmem:[%s837_s1 + $0x8] sm:$0xff]  }
   0x2   :  { %547 = vmatpush3.bf16.msra.mxu1 %v604_v0  ;;  %550 = vmatprep.mubr.msk.bf16.mxu1 %vm653_vm0, %v652_v1  ;;  %v46_v3 = vld [vmem:[%s836_s0] sm:$0xff] }
   0x3   :  { %548 = vmatprep.subr.bf16.mxu1 %v652_v1  ;;  %570 = vmatprep.mubr.msk.bf16.mxu0 %vm653_vm0, %v652_v1  ;;  %v47_v4 = vpack.c.bf16 %v46_v3, %v46_v3 }
   0x6   :  { %549 = vmatpush3.bf16.msra.mxu1 %v605_v2 }
   0x7   :  { %554 = vmatprep.subr.bf16.mxu1 %v652_v1 }
   0x9   :  { %551 = vmatmul.mubr.msk.bf16.vlgmr.msra.gmra.mrb[0].mxu1 %vm71_vm1, %v47_v4 }
   0xa   :  { %562 = vmatprep.mubr.msk.bf16.mxu1 %vm653_vm0, %v652_v1 }
   0xb   :  { %18 = vsyncpa [#allocation3], 0  ;;  %v606_v5 = vld [vmem:[%s839_s3] sm:$0xff]   ;;  %v607_v6 = vld [vmem:[%s839_s3 + $0x8] sm:$0xff]   ;;  %s654_s22 = smov 64   ;;  %vm156_vm2 = vcmask 523264  }
   0xc   :  { %555 = vmatpush3.bf16.msra.mxu1 %v606_v5  ;;  %v608_v7 = vld [vmem:[%s839_s3 + $0x10] sm:$0xff]   ;;  %v609_v8 = vld [vmem:[%s839_s3 + $0x18] sm:$0xff]   ;;  %v499_v9 = vld [vmem:[%s838_s2] ss:$0 sm:$0xff]  ;;  %vm287_vm3 = vcmask 1043456   ;;  %vm283_vm4 = vcmask 64512  }
   0xd   :  { %556 = vmatprep.subr.bf16.mxu1 %v652_v1  ;;  %v610_v17 = vld [vmem:[%s841_s5] sm:$0xff]   ;;  %v611_v18 = vld [vmem:[%s841_s5 + $0x8] sm:$0xff]   ;;  %v616_v51 = vld [vmem:[%s847_s11 + $0x10] sm:$0xff]   ;;  %vm483_vm5 = vcmask 195584  }
   0xe   :  { %567 = vmatpush3.bf16.msra.mxu0 %v610_v17  ;;  %v503_v19 = vld [vmem:[%s840_s4] ss:$0 sm:$0xff]  ;;  %v613_v40 = vld [vmem:[%s845_s9 + $0x8] sm:$0xff]   ;;  %v617_v52 = vld [vmem:[%s847_s11 + $0x18] sm:$0xff]  }
   0xf   :  { %568 = vmatprep.subr.bf16.mxu0 %v652_v1  ;;  %v275_v27 = vld [vmem:[%s843_s7] sm:$0xf]  ;;  %v615_v50 = vld [vmem:[%s847_s11 + $0x8] sm:$0xff]  }
  0x10   :  { %557 = vmatpush3.bf16.msra.mxu1 %v607_v6  ;;  %v289_v28 = vsel %vm287_vm3, %v275_v27, 0  ;;  %v509_v29 = vld [vmem:[%s842_s6] ss:$0 sm:$0xff] }
  0x11   :  { %558 = vmatprep.subr.bf16.mxu1 %v652_v1  ;;  %v612_v39 = vld [vmem:[%s845_s9] sm:$0xff]  }
  0x12   :  { %569 = vmatpush3.bf16.msra.mxu0 %v611_v18  ;;  %v513_v41 = vld [vmem:[%s844_s8] ss:$0 sm:$0xff] }
  0x13   :  { %574 = vmatprep.subr.bf16.mxu0 %v652_v1  ;;  %v614_v49 = vld [vmem:[%s847_s11] sm:$0xff]   ;;  %s655_s11 = smov [#allocation2]  }
  0x14   :  { %559 = vmatpush3.bf16.msra.mxu1 %v608_v7  ;;  %v515_v53 = vld [vmem:[%s846_s10] ss:$0 sm:$0xff]  ;;  %s491_s23 = sshll.u32 %s655_s11, 4  ;;  %s492_s23 = int_to_ptr.vmem [resolvable:$true] %s491_s23 }
  0x15   :  { %560 = vmatprep.subr.bf16.mxu1 %v652_v1  ;;  %v519_v61 = vld [vmem:[%s848_s12] ss:$0 sm:$0xff]  ;;  %s628_s10 = scalar_lea.vmem %s492_s23, 128  ;;  %p633_p1 = scmp.lt.s32.totalorder %s492_s23, %s492_s23 }
  0x16   :  { %p629_p0 = scmp.ne.s32.totalorder %s492_s23, %s628_s10  ;;  %p634_p2 = scmp.lt.s32.totalorder %s628_s10, %s628_s10 }
  0x18   :  { %561 = vmatpush3.bf16.msra.mxu1 %v609_v8  ;;  %p635_p3 = por %p634_p2, %p633_p1 }
  0x19   :  { %580 = vmatprep.subr.bf16.mxu1 %v652_v1 }
  0x1a   :  { %p636_p4 = pnand %p635_p3, %p629_p0 }
  0xdc   :  { %v109_v10 = vpop.f32.mrb[0].mxu1 }
  0xdd   :  { %v110_v11 = vadd.f32 %v499_v9, %v109_v10  ;;  %v552_v12 = vpop.f32.mrb[1].mxu1 }
  0xde   :  { %v112_v13 = vpop.f32.mrb[2].mxu1 }
  0xdf   :  { %618 = vtanh.f32 %v110_v11  ;;  %v553_v14 = vpop.f32.mrb[3].mxu1  ;;  %270 = vrot.lane.b32.xlu0 %v110_v11, %s654_s22 }
  0xe9   :  { %v619_v15 = vpop.eup %618 }
  0xea   :  { %v116_v16 = vpack.c.bf16 %v619_v15, %v619_v15 }
  0xec   :  { %563 = vmatmul.mubr.msk.bf16.vlgmr.msra.gmra.mrb[4].mxu1 %vm156_vm2, %v116_v16 }
  0xed   :  { %584 = vmatprep.mubr.msk.bf16.mxu1 %vm653_vm0, %v652_v1  ;;  %581 = vmatpush3.bf16.msra.mxu1 %v612_v39 }
  0xee   :  { %582 = vmatprep.subr.bf16.mxu1 %v652_v1 }
  0xf1   :  { %583 = vmatpush3.bf16.msra.mxu1 %v613_v40 }
 0x151   :  { %v271_v36 = vpop.permute.xlu0 %270 }
 0x1bf   :  { %v194_v20 = vpop.f32.mrb[4].mxu1 }
 0x1c0   :  { %v195_v21 = vadd.f32 %v503_v19, %v194_v20  ;;  %v564_v22 = vpop.f32.mrb[5].mxu1 }
 0x1c1   :  { %v197_v23 = vpop.f32.mrb[6].mxu1 }
 0x1c2   :  { %620 = vtanh.f32 %v195_v21  ;;  %v565_v24 = vpop.f32.mrb[7].mxu1 }
 0x1cc   :  { %v621_v25 = vpop.eup %620 }
 0x1cd   :  { %v201_v26 = vpack.c.bf16 %v621_v25, %v621_v25 }
 0x1cf   :  { %571 = vmatmul.mubr.msk.bf16.vlgmr.msra.gmra.mrb[0].mxu0 %vm71_vm1, %v201_v26 }
 0x1d0   :  { %576 = vmatprep.mubr.msk.bf16.mxu0 %vm653_vm0, %v652_v1  ;;  %575 = vmatpush3.bf16.msra.mxu0 %v289_v28 }
 0x1d1   :  { %588 = vmatprep.subr.bf16.mxu0 %v652_v1 }
 0x2a2   :  { %v262_v30 = vpop.f32.mrb[0].mxu0 }
 0x2a3   :  { %v263_v31 = vadd.f32 %v509_v29, %v262_v30  ;;  %v572_v32 = vpop.f32.mrb[1].mxu0 }
 0x2a4   :  { %v265_v33 = vpop.f32.mrb[2].mxu0 }
 0x2a5   :  { %622 = vtanh.f32 %v263_v31  ;;  %v573_v34 = vpop.f32.mrb[3].mxu0 }
 0x2af   :  { %v623_v35 = vpop.eup %622 }
 0x2b0   :  { %v273_v37 = vadd.f32 %v623_v35, %v271_v36 }
 0x2b2   :  { %v274_v38 = vpack.c.bf16 %v273_v37, %v273_v37 }
 0x2b4   :  { %577 = vmatmul.mubr.msk.bf16.vlgmr.msra.gmra.mrb[4].mxu0 %vm283_vm4, %v274_v38 }
 0x2b5   :  { %596 = vmatprep.mubr.msk.bf16.mxu0 %vm653_vm0, %v652_v1  ;;  %589 = vmatpush3.bf16.msra.mxu0 %v614_v49 }
 0x2b6   :  { %590 = vmatprep.subr.bf16.mxu0 %v652_v1 }
 0x2b9   :  { %591 = vmatpush3.bf16.msra.mxu0 %v615_v50 }
 0x2ba   :  { %592 = vmatprep.subr.bf16.mxu0 %v652_v1 }
 0x2bd   :  { %593 = vmatpush3.bf16.msra.mxu0 %v616_v51 }
 0x2be   :  { %594 = vmatprep.subr.bf16.mxu0 %v652_v1 }
 0x2c1   :  { %595 = vmatpush3.bf16.msra.mxu0 %v617_v52 }
 0x387   :  { %v325_v42 = vpop.f32.mrb[4].mxu0 }
 0x388   :  { %v326_v43 = vadd.f32 %v513_v41, %v325_v42  ;;  %v578_v44 = vpop.f32.mrb[5].mxu0 }
 0x389   :  { %v328_v45 = vpop.f32.mrb[6].mxu0 }
 0x38a   :  { %624 = vtanh.f32 %v326_v43  ;;  %v579_v46 = vpop.f32.mrb[7].mxu0 }
 0x394   :  { %v625_v47 = vpop.eup %624 }
 0x395   :  { %v332_v48 = vpack.c.bf16 %v625_v47, %v625_v47 }
 0x397   :  { %585 = vmatmul.mubr.msk.bf16.vlgmr.msra.gmra.mrb[8].mxu1 %vm71_vm1, %v332_v48 }
 0x46a   :  { %v393_v54 = vpop.f32.mrb[8].mxu1 }
 0x46b   :  { %v394_v55 = vadd.f32 %v515_v53, %v393_v54  ;;  %v586_v56 = vpop.f32.mrb[9].mxu1 }
 0x46c   :  { %v396_v57 = vpop.f32.mrb[10].mxu1 }
 0x46d   :  { %626 = vtanh.f32 %v394_v55  ;;  %v587_v58 = vpop.f32.mrb[11].mxu1 }
 0x477   :  { %v627_v59 = vpop.eup %626 }
 0x478   :  { %v400_v60 = vpack.c.bf16 %v627_v59, %v627_v59 }
 0x47a   :  { %597 = vmatmul.mubr.msk.bf16.vlgmr.msra.gmra.mrb[8].mxu0 %vm156_vm2, %v400_v60 }
 0x54d   :  { %v477_v62 = vpop.f32.mrb[8].mxu0 }
 0x54e   :  { %v478_v63 = vadd.f32 %v519_v61, %v477_v62  ;;  %v598_v0 = vpop.f32.mrb[9].mxu0 }
 0x54f   :  { %v480_v1 = vpop.f32.mrb[10].mxu0 }
 0x550   :  { %v599_v2 = vpop.f32.mrb[11].mxu0  ;;  %484 = vst.msk [vmem:[#allocation2] sm:$0xff] %vm483_vm5, %v478_v63 }
 0x551   :  { %639 = shalt.err (!%p636_p4)
}
 0x552   :  { %s640_s12 = scalar_lea.hbm %s849_s13, 128 }
 0x553   :  { %p641_p5 = scmp.ne.s32.totalorder %s849_s13, %s640_s12  ;;  %p644_p6 = scmp.lt.u32.totalorder %s640_s12, %s849_s13 }
 0x555   :  { %p646_p7 = pnand %p644_p6, %p641_p5 }
 0x557   :  { %649 = shalt.err (!%p646_p7)
}
 0x558   :  { %494 = dma.vmem_to_hbm [thread:$0]  %s492_s23, 128, %s849_s13, [#allocation3]  }
 0x559   :  { %650 = dma.done.wait [#allocation3], 128  }
 0x55a   :  { %651 = vsyncadd [#allocation3], 4294967168 }
 0x55b   :  { %498 = vsyncpa [#allocation3], 1 }

</bundles_post_ra>
